<compile_context>
chip_gen: v7x
topology: tpu7x:2x2x1
jax: 0.10.0
libtpu: 0.0.40
codegen_flags: <defaults>
</compile_context>

<pallas_src>
import jax
import jax.numpy as jnp
import numpy as np
from jax.experimental import pallas as pl
from jax.experimental.pallas import tpu as pltpu

# ---------------- problem sizes (small, consistent with the module) ----------
VOCAB = 50                 # input_shape  (embedding rows)
H = 32                     # hidden_layers
B = 2                      # batch
S = 8                      # sequence length
NUM_DIRS = 2               # bidirectional=True, no_of_layers=1
GW = NUM_DIRS * H          # 64: width of one fused gate block [fwd | bwd]
GF = 4 * GW                # 256: all four gate blocks [f | i | o | g]


# ---------------------------- Pallas kernel ----------------------------------
def bilstm_fused_kernel(xaug_ref, wih_ref, whh_ref, b_ref, h0_ref, c0_ref,
                        out_ref, hn_ref, cn_ref):
    """Fused bidirectional LSTM, single invocation, fully unrolled time loop.

    xaug_ref: (S*B, 2H)  augmented embeddings; row (s*B+b) = [x[s,b] | x[S-1-s,b]]
    wih_ref:  (2H, 8H)   fused input->gate weights, gate-major columns
                         [f_f f_b | i_f i_b | o_f o_b | g_f g_b]; fwd rows feed
                         fwd columns, bwd rows feed bwd columns (zeros elsewhere)
    whh_ref:  (2H, 8H)   fused hidden->gate weights, block-diag over direction
    b_ref:    (1, 8H)    fused b_ih + b_hh
    h0/c0:    (B, 2H)    initial states, [fwd | bwd] along lanes
    out_ref:  (S, B, 2H) output sequence ([h_fwd | h_bwd] per timestep)
    hn/cn:    (B, 2H)    final states
    """
    # Hoisted input projection: one MXU matmul covering every timestep, both
    # directions and all four gates. Because of the augmented-input / block-
    # structured W_ih layout, rows s*B:(s+1)*B already hold the per-step gate
    # inputs for BOTH directions (fwd uses x[s], bwd uses x[S-1-s]).
    xw = jnp.dot(xaug_ref[...], wih_ref[...],
                 preferred_element_type=jnp.float32) + b_ref[...]     # (S*B, 8H)

    h = h0_ref[...]
    c = c0_ref[...]

    # Fully unrolled time loop; h/c stay in vector registers.
    for s in range(S):
        x_gates = xw[s * B:(s + 1) * B, :]                            # (B, 8H)

        # Recurrent matmul; RHS read from the VMEM ref (not pinned in vregs).
        gates = x_gates + jnp.dot(h, whh_ref[...],
                                  preferred_element_type=jnp.float32)

        # Gate order [f | i | o | g]: sigmoid over the contiguous f|i|o slab,
        # tanh only over g. Each 2H block's [fwd|bwd] layout matches h/c.
        s_fio = jax.nn.sigmoid(gates[:, 0:3 * GW])
        f_g = s_fio[:, 0 * GW:1 * GW]
        i_g = s_fio[:, 1 * GW:2 * GW]
        o_g = s_fio[:, 2 * GW:3 * GW]
        g_g = jnp.tanh(gates[:, 3 * GW:4 * GW])

        c = f_g * c + i_g * g_g
        h = o_g * jnp.tanh(c)

        # fwd half of timestep s and bwd half of timestep S-1-s finish here.
        out_ref[s, :, 0:H] = h[:, 0:H]
        out_ref[S - 1 - s, :, H:2 * H] = h[:, H:2 * H]

    hn_ref[...] = h
    cn_ref[...] = c


def bilstm_pallas(x_aug, w_ih_f, w_hh_f, bias_f, h0c, c0c):
    """x_aug: (S*B,2H); w_ih_f/w_hh_f: (2H,8H); bias_f: (1,8H); h0c/c0c: (B,2H).
    Returns out (S,B,2H), hn (B,2H), cn (B,2H)."""
    vmem = pl.BlockSpec(memory_space=pltpu.MemorySpace.VMEM)
    out, hn, cn = pl.pallas_call(
        bilstm_fused_kernel,
        out_shape=(
            jax.ShapeDtypeStruct((S, B, NUM_DIRS * H), jnp.float32),
            jax.ShapeDtypeStruct((B, NUM_DIRS * H), jnp.float32),
            jax.ShapeDtypeStruct((B, NUM_DIRS * H), jnp.float32),
        ),
        in_specs=[vmem] * 6,
        out_specs=(vmem, vmem, vmem),
    )(x_aug, w_ih_f, w_hh_f, bias_f, h0c, c0c)
    return out, hn, cn


# ------------------ one-time weight packing (init path, numpy) ----------------
# Fused gate-column order [f, i, o, g]; PyTorch row-block order is (i, f, g, o).
_GATE_ORDER = (1, 0, 3, 2)   # position p -> PyTorch gate row-block index


def pack_bilstm_weights(w_ih, w_hh, b_ih, b_hh):
    """Pack per-direction PyTorch-layout LSTM weights into the fused layouts
    used by the kernel. Runs ONCE at init (numpy) -> zero per-call cost.

    Returns:
      w_ih_aug (2H, 8H): fwd rows (0:H) feed fwd gate columns, bwd rows (H:2H)
                         feed bwd gate columns, zeros elsewhere (matches the
                         augmented input [x_s | x_{S-1-s}]).
      w_hh_f   (2H, 8H): block-diagonal over direction.
      bias_f   (1, 8H):  b_ih + b_hh, fused column layout.
    """
    w_ih = np.asarray(w_ih, np.float32)
    w_hh = np.asarray(w_hh, np.float32)
    b_ih = np.asarray(b_ih, np.float32)
    b_hh = np.asarray(b_hh, np.float32)

    w_ih_aug = np.zeros((NUM_DIRS * H, GF), np.float32)
    w_hh_f = np.zeros((NUM_DIRS * H, GF), np.float32)
    bias_f = np.zeros((GF,), np.float32)
    for p, k in enumerate(_GATE_ORDER):
        for d in range(NUM_DIRS):
            c0 = p * GW + d * H
            c1 = c0 + H
            w_ih_aug[d * H:(d + 1) * H, c0:c1] = w_ih[d, k * H:(k + 1) * H, :].T
            w_hh_f[d * H:(d + 1) * H, c0:c1] = w_hh[d, k * H:(k + 1) * H, :].T
            bias_f[c0:c1] = (b_ih[d, k * H:(k + 1) * H]
                             + b_hh[d, k * H:(k + 1) * H])
    return (jnp.asarray(w_ih_aug), jnp.asarray(w_hh_f),
            jnp.asarray(bias_f)[None, :])


# ---------------------------- Encoder wrapper ---------------------------------
def init_params(key):
    """Deterministic parameter init matching the torch module's shapes."""
    (k_emb, k_wi0, k_wh0, k_bi0, k_bh0,
     k_wi1, k_wh1, k_bi1, k_bh1) = jax.random.split(key, 9)
    scale = 1.0 / np.sqrt(H)
    emb = jax.random.normal(k_emb, (VOCAB, H), jnp.float32)          # Embedding

    def u(k, shape):
        return jax.random.uniform(k, shape, jnp.float32, -scale, scale)

    # per-direction LSTM weights, PyTorch layout (4H, H) with gate order i,f,g,o
    w_ih = jnp.stack([u(k_wi0, (4 * H, H)), u(k_wi1, (4 * H, H))])
    w_hh = jnp.stack([u(k_wh0, (4 * H, H)), u(k_wh1, (4 * H, H))])
    b_ih = jnp.stack([u(k_bi0, (4 * H,)), u(k_bi1, (4 * H,))])
    b_hh = jnp.stack([u(k_bh0, (4 * H,)), u(k_bh1, (4 * H,))])
    # fully_connected_layer exists in __init__ but is unused in forward().
    return emb, w_ih, w_hh, b_ih, b_hh


def prepare_encoder_params(params):
    """Hoisted out of the per-call path: pack weights once."""
    emb_table, w_ih, w_hh, b_ih, b_hh = params
    w_ih_aug, w_hh_f, bias_f = pack_bilstm_weights(w_ih, w_hh, b_ih, b_hh)
    return emb_table, w_ih_aug, w_hh_f, bias_f


@jax.jit
def encoder_forward(packed_params, input_ids, h0, c0):
    emb_table, w_ih_aug, w_hh_f, bias_f = packed_params
    # Embedding lookup (glue): (S, B) int32 -> (S, B, H) f32
    embeddings = jnp.take(emb_table, input_ids, axis=0)
    # TODO(synk): nn.Dropout(p=0.2) is stochastic in train mode; modeled here
    # in eval mode (identity).
    drop = embeddings

    # Augmented input: row s = [x_s | x_{S-1-s}] so one in-kernel matmul yields
    # per-step gate inputs for both directions (kills the per-step select).
    x_aug = jnp.concatenate([drop, drop[::-1]], axis=-1)             # (S,B,2H)
    x_aug = x_aug.reshape(S * B, NUM_DIRS * H)

    # (2, B, H) -> (B, 2H): [fwd | bwd] per batch row (tiny, fused by XLA).
    h0c = jnp.transpose(h0, (1, 0, 2)).reshape(B, NUM_DIRS * H)
    c0c = jnp.transpose(c0, (1, 0, 2)).reshape(B, NUM_DIRS * H)

    out_seq, hn_c, cn_c = bilstm_pallas(x_aug, w_ih_aug, w_hh_f, bias_f,
                                        h0c, c0c)

    h_n = jnp.transpose(hn_c.reshape(B, NUM_DIRS, H), (1, 0, 2))     # (2,B,H)
    c_n = jnp.transpose(cn_c.reshape(B, NUM_DIRS, H), (1, 0, 2))
    return out_seq, (h_n, c_n)


# ---------------------------- pure-JAX reference ------------------------------
def encoder_ref(params, input_ids, h0, c0):
    emb_table, w_ih, w_hh, b_ih, b_hh = params
    x = jnp.take(emb_table, input_ids, axis=0)
    outs, hns, cns = [], [], []
    for d in range(NUM_DIRS):
        h, c = h0[d], c0[d]
        w_i, w_h = w_ih[d].T, w_hh[d].T
        b = b_ih[d] + b_hh[d]
        out_d = [None] * S
        t_order = range(S) if d == 0 else range(S - 1, -1, -1)
        for t in t_order:
            g = x[t] @ w_i + h @ w_h + b
            i_g = jax.nn.sigmoid(g[:, 0 * H:1 * H])
            f_g = jax.nn.sigmoid(g[:, 1 * H:2 * H])
            g_g = jnp.tanh(g[:, 2 * H:3 * H])
            o_g = jax.nn.sigmoid(g[:, 3 * H:4 * H])
            c = f_g * c + i_g * g_g
            h = o_g * jnp.tanh(c)
            out_d[t] = h
        outs.append(jnp.stack(out_d))
        hns.append(h)
        cns.append(c)
    return (jnp.concatenate(outs, axis=-1),
            (jnp.stack(hns), jnp.stack(cns)))


# ---------------------------------- main --------------------------------------
if __name__ == "__main__":
    key = jax.random.PRNGKey(0)
    k_params, k_ids = jax.random.split(key)
    params = init_params(k_params)
    packed_params = prepare_encoder_params(params)   # once, off the call path

    input_ids = jax.random.randint(k_ids, (S, B), 0, VOCAB, dtype=jnp.int32)
    # Encoder.initialize_weights(batch_size): zeros of (num_layers*2, B, H)
    h0 = jnp.zeros((NUM_DIRS, B, H), jnp.float32)
    c0 = jnp.zeros((NUM_DIRS, B, H), jnp.float32)

    out_seq, (h_n, c_n) = encoder_forward(packed_params, input_ids, h0, c0)
    jax.block_until_ready((out_seq, h_n, c_n))

    ref_out, (ref_h, ref_c) = encoder_ref(params, input_ids, h0, c0)
    np.testing.assert_allclose(np.asarray(out_seq), np.asarray(ref_out),
                               atol=2e-5, rtol=2e-5)
    np.testing.assert_allclose(np.asarray(h_n), np.asarray(ref_h),
                               atol=2e-5, rtol=2e-5)
    np.testing.assert_allclose(np.asarray(c_n), np.asarray(ref_c),
                               atol=2e-5, rtol=2e-5)

    assert out_seq.shape == (S, B, 2 * H)
    assert h_n.shape == (NUM_DIRS, B, H) and c_n.shape == (NUM_DIRS, B, H)
    print("KERNEL_OK")
</pallas_src>

<mosaic_0001>
module attributes {stable_mosaic.version = 11 : i64} {
  func.func @bilstm_fused_kernel(%arg0: memref<16x64xf32, #tpu.memory_space<vmem>>, %arg1: memref<64x256xf32, #tpu.memory_space<vmem>>, %arg2: memref<64x256xf32, #tpu.memory_space<vmem>>, %arg3: memref<1x256xf32, #tpu.memory_space<vmem>>, %arg4: memref<2x64xf32, #tpu.memory_space<vmem>>, %arg5: memref<2x64xf32, #tpu.memory_space<vmem>>, %arg6: memref<8x2x64xf32, #tpu.memory_space<vmem>>, %arg7: memref<2x64xf32, #tpu.memory_space<vmem>>, %arg8: memref<2x64xf32, #tpu.memory_space<vmem>>) attributes {dimension_semantics = [], scalar_prefetch = 0 : i64, scratch_operands = 0 : i64, tpu.core_type = #tpu.core_type<tc>} {
    %c0 = arith.constant 0 : index
    %c0_0 = arith.constant 0 : index
    %0 = vector.load %arg0[%c0, %c0_0] : memref<16x64xf32, #tpu.memory_space<vmem>>, vector<16x64xf32>
    %c0_1 = arith.constant 0 : index
    %c0_2 = arith.constant 0 : index
    %1 = vector.load %arg1[%c0_1, %c0_2] : memref<64x256xf32, #tpu.memory_space<vmem>>, vector<64x256xf32>
    %cst = arith.constant dense<0.000000e+00> : vector<16x256xf32>
    %2 = tpu.matmul %0, %1, %cst {dimension_numbers = #tpu.dot_dimension_numbers<[1], [0], [0], [1], [0, 0, 1, 1], [], []>} : vector<16x64xf32>, vector<64x256xf32>, vector<16x256xf32> -> vector<16x256xf32>
    %c0_3 = arith.constant 0 : index
    %c0_4 = arith.constant 0 : index
    %3 = vector.load %arg3[%c0_3, %c0_4] : memref<1x256xf32, #tpu.memory_space<vmem>>, vector<1x256xf32>
    %4 = vector.broadcast %3 : vector<1x256xf32> to vector<16x256xf32>
    %5 = arith.addf %2, %4 : vector<16x256xf32>
    %c0_5 = arith.constant 0 : index
    %c0_6 = arith.constant 0 : index
    %6 = vector.load %arg4[%c0_5, %c0_6] : memref<2x64xf32, #tpu.memory_space<vmem>>, vector<2x64xf32>
    %c0_7 = arith.constant 0 : index
    %c0_8 = arith.constant 0 : index
    %7 = vector.load %arg5[%c0_7, %c0_8] : memref<2x64xf32, #tpu.memory_space<vmem>>, vector<2x64xf32>
    %8 = vector.extract_strided_slice %5 {offsets = [0, 0], sizes = [2, 256], strides = [1, 1]} : vector<16x256xf32> to vector<2x256xf32>
    %c0_9 = arith.constant 0 : index
    %c0_10 = arith.constant 0 : index
    %9 = vector.load %arg2[%c0_9, %c0_10] : memref<64x256xf32, #tpu.memory_space<vmem>>, vector<64x256xf32>
    %cst_11 = arith.constant dense<0.000000e+00> : vector<2x256xf32>
    %10 = tpu.matmul %6, %9, %cst_11 {dimension_numbers = #tpu.dot_dimension_numbers<[1], [0], [0], [1], [0, 0, 1, 1], [], []>} : vector<2x64xf32>, vector<64x256xf32>, vector<2x256xf32> -> vector<2x256xf32>
    %11 = arith.addf %8, %10 : vector<2x256xf32>
    %12 = vector.extract_strided_slice %11 {offsets = [0, 0], sizes = [2, 192], strides = [1, 1]} : vector<2x256xf32> to vector<2x192xf32>
    %13 = arith.negf %12 : vector<2x192xf32>
    %14 = math.exp %13 : vector<2x192xf32>
    %cst_12 = arith.constant 1.000000e+00 : f32
    %15 = vector.broadcast %cst_12 : f32 to vector<2x192xf32>
    %16 = arith.addf %15, %14 : vector<2x192xf32>
    %17 = arith.divf %15, %16 : vector<2x192xf32>
    %18 = vector.extract_strided_slice %17 {offsets = [0, 0], sizes = [2, 64], strides = [1, 1]} : vector<2x192xf32> to vector<2x64xf32>
    %19 = vector.extract_strided_slice %17 {offsets = [0, 64], sizes = [2, 64], strides = [1, 1]} : vector<2x192xf32> to vector<2x64xf32>
    %20 = vector.extract_strided_slice %17 {offsets = [0, 128], sizes = [2, 64], strides = [1, 1]} : vector<2x192xf32> to vector<2x64xf32>
    %21 = vector.extract_strided_slice %11 {offsets = [0, 192], sizes = [2, 64], strides = [1, 1]} : vector<2x256xf32> to vector<2x64xf32>
    %22 = math.tanh %21 : vector<2x64xf32>
    %23 = arith.mulf %18, %7 : vector<2x64xf32>
    %24 = arith.mulf %19, %22 : vector<2x64xf32>
    %25 = arith.addf %23, %24 : vector<2x64xf32>
    %26 = math.tanh %25 : vector<2x64xf32>
    %27 = arith.mulf %20, %26 : vector<2x64xf32>
    %28 = vector.extract_strided_slice %27 {offsets = [0, 0], sizes = [2, 32], strides = [1, 1]} : vector<2x64xf32> to vector<2x32xf32>
    %c0_13 = arith.constant 0 : index
    %c0_14 = arith.constant 0 : index
    %c0_15 = arith.constant 0 : index
    %29 = vector.load %arg6[%c0_13, %c0_14, %c0_15] : memref<8x2x64xf32, #tpu.memory_space<vmem>>, vector<1x2x32xf32>
    %30 = vector.shape_cast %29 : vector<1x2x32xf32> to vector<2x32xf32>
    %31 = vector.shape_cast %28 : vector<2x32xf32> to vector<1x2x32xf32>
    tpu.vector_store %arg6[%c0_13, %c0_14, %c0_15], %31 {strides = array<i32>} : memref<8x2x64xf32, #tpu.memory_space<vmem>>, vector<1x2x32xf32>,
    %32 = vector.extract_strided_slice %27 {offsets = [0, 32], sizes = [2, 32], strides = [1, 1]} : vector<2x64xf32> to vector<2x32xf32>
    %c7 = arith.constant 7 : index
    %c0_16 = arith.constant 0 : index
    %c32 = arith.constant 32 : index
    %33 = vector.load %arg6[%c7, %c0_16, %c32] : memref<8x2x64xf32, #tpu.memory_space<vmem>>, vector<1x2x32xf32>
    %34 = vector.shape_cast %33 : vector<1x2x32xf32> to vector<2x32xf32>
    %35 = vector.shape_cast %32 : vector<2x32xf32> to vector<1x2x32xf32>
    tpu.vector_store %arg6[%c7, %c0_16, %c32], %35 {strides = array<i32>} : memref<8x2x64xf32, #tpu.memory_space<vmem>>, vector<1x2x32xf32>,
    %36 = vector.extract_strided_slice %5 {offsets = [2, 0], sizes = [2, 256], strides = [1, 1]} : vector<16x256xf32> to vector<2x256xf32>
    %c0_17 = arith.constant 0 : index
    %c0_18 = arith.constant 0 : index
    %37 = vector.load %arg2[%c0_17, %c0_18] : memref<64x256xf32, #tpu.memory_space<vmem>>, vector<64x256xf32>
    %cst_19 = arith.constant dense<0.000000e+00> : vector<2x256xf32>
    %38 = tpu.matmul %27, %37, %cst_19 {dimension_numbers = #tpu.dot_dimension_numbers<[1], [0], [0], [1], [0, 0, 1, 1], [], []>} : vector<2x64xf32>, vector<64x256xf32>, vector<2x256xf32> -> vector<2x256xf32>
    %39 = arith.addf %36, %38 : vector<2x256xf32>
    %40 = vector.extract_strided_slice %39 {offsets = [0, 0], sizes = [2, 192], strides = [1, 1]} : vector<2x256xf32> to vector<2x192xf32>
    %41 = arith.negf %40 : vector<2x192xf32>
    %42 = math.exp %41 : vector<2x192xf32>
    %cst_20 = arith.constant 1.000000e+00 : f32
    %43 = vector.broadcast %cst_20 : f32 to vector<2x192xf32>
    %44 = arith.addf %43, %42 : vector<2x192xf32>
    %45 = arith.divf %43, %44 : vector<2x192xf32>
    %46 = vector.extract_strided_slice %45 {offsets = [0, 0], sizes = [2, 64], strides = [1, 1]} : vector<2x192xf32> to vector<2x64xf32>
    %47 = vector.extract_strided_slice %45 {offsets = [0, 64], sizes = [2, 64], strides = [1, 1]} : vector<2x192xf32> to vector<2x64xf32>
    %48 = vector.extract_strided_slice %45 {offsets = [0, 128], sizes = [2, 64], strides = [1, 1]} : vector<2x192xf32> to vector<2x64xf32>
    %49 = vector.extract_strided_slice %39 {offsets = [0, 192], sizes = [2, 64], strides = [1, 1]} : vector<2x256xf32> to vector<2x64xf32>
    %50 = math.tanh %49 : vector<2x64xf32>
    %51 = arith.mulf %46, %25 : vector<2x64xf32>
    %52 = arith.mulf %47, %50 : vector<2x64xf32>
    %53 = arith.addf %51, %52 : vector<2x64xf32>
    %54 = math.tanh %53 : vector<2x64xf32>
    %55 = arith.mulf %48, %54 : vector<2x64xf32>
    %56 = vector.extract_strided_slice %55 {offsets = [0, 0], sizes = [2, 32], strides = [1, 1]} : vector<2x64xf32> to vector<2x32xf32>
    %c1 = arith.constant 1 : index
    %c0_21 = arith.constant 0 : index
    %c0_22 = arith.constant 0 : index
    %57 = vector.load %arg6[%c1, %c0_21, %c0_22] : memref<8x2x64xf32, #tpu.memory_space<vmem>>, vector<1x2x32xf32>
    %58 = vector.shape_cast %57 : vector<1x2x32xf32> to vector<2x32xf32>
    %59 = vector.shape_cast %56 : vector<2x32xf32> to vector<1x2x32xf32>
    tpu.vector_store %arg6[%c1, %c0_21, %c0_22], %59 {strides = array<i32>} : memref<8x2x64xf32, #tpu.memory_space<vmem>>, vector<1x2x32xf32>,
    %60 = vector.extract_strided_slice %55 {offsets = [0, 32], sizes = [2, 32], strides = [1, 1]} : vector<2x64xf32> to vector<2x32xf32>
    %c6 = arith.constant 6 : index
    %c0_23 = arith.constant 0 : index
    %c32_24 = arith.constant 32 : index
    %61 = vector.load %arg6[%c6, %c0_23, %c32_24] : memref<8x2x64xf32, #tpu.memory_space<vmem>>, vector<1x2x32xf32>
    %62 = vector.shape_cast %61 : vector<1x2x32xf32> to vector<2x32xf32>
    %63 = vector.shape_cast %60 : vector<2x32xf32> to vector<1x2x32xf32>
    tpu.vector_store %arg6[%c6, %c0_23, %c32_24], %63 {strides = array<i32>} : memref<8x2x64xf32, #tpu.memory_space<vmem>>, vector<1x2x32xf32>,
    %64 = vector.extract_strided_slice %5 {offsets = [4, 0], sizes = [2, 256], strides = [1, 1]} : vector<16x256xf32> to vector<2x256xf32>
    %c0_25 = arith.constant 0 : index
    %c0_26 = arith.constant 0 : index
    %65 = vector.load %arg2[%c0_25, %c0_26] : memref<64x256xf32, #tpu.memory_space<vmem>>, vector<64x256xf32>
    %cst_27 = arith.constant dense<0.000000e+00> : vector<2x256xf32>
    %66 = tpu.matmul %55, %65, %cst_27 {dimension_numbers = #tpu.dot_dimension_numbers<[1], [0], [0], [1], [0, 0, 1, 1], [], []>} : vector<2x64xf32>, vector<64x256xf32>, vector<2x256xf32> -> vector<2x256xf32>
    %67 = arith.addf %64, %66 : vector<2x256xf32>
    %68 = vector.extract_strided_slice %67 {offsets = [0, 0], sizes = [2, 192], strides = [1, 1]} : vector<2x256xf32> to vector<2x192xf32>
    %69 = arith.negf %68 : vector<2x192xf32>
    %70 = math.exp %69 : vector<2x192xf32>
    %cst_28 = arith.constant 1.000000e+00 : f32
    %71 = vector.broadcast %cst_28 : f32 to vector<2x192xf32>
    %72 = arith.addf %71, %70 : vector<2x192xf32>
    %73 = arith.divf %71, %72 : vector<2x192xf32>
    %74 = vector.extract_strided_slice %73 {offsets = [0, 0], sizes = [2, 64], strides = [1, 1]} : vector<2x192xf32> to vector<2x64xf32>
    %75 = vector.extract_strided_slice %73 {offsets = [0, 64], sizes = [2, 64], strides = [1, 1]} : vector<2x192xf32> to vector<2x64xf32>
    %76 = vector.extract_strided_slice %73 {offsets = [0, 128], sizes = [2, 64], strides = [1, 1]} : vector<2x192xf32> to vector<2x64xf32>
    %77 = vector.extract_strided_slice %67 {offsets = [0, 192], sizes = [2, 64], strides = [1, 1]} : vector<2x256xf32> to vector<2x64xf32>
    %78 = math.tanh %77 : vector<2x64xf32>
    %79 = arith.mulf %74, %53 : vector<2x64xf32>
    %80 = arith.mulf %75, %78 : vector<2x64xf32>
    %81 = arith.addf %79, %80 : vector<2x64xf32>
    %82 = math.tanh %81 : vector<2x64xf32>
    %83 = arith.mulf %76, %82 : vector<2x64xf32>
    %84 = vector.extract_strided_slice %83 {offsets = [0, 0], sizes = [2, 32], strides = [1, 1]} : vector<2x64xf32> to vector<2x32xf32>
    %c2 = arith.constant 2 : index
    %c0_29 = arith.constant 0 : index
    %c0_30 = arith.constant 0 : index
    %85 = vector.load %arg6[%c2, %c0_29, %c0_30] : memref<8x2x64xf32, #tpu.memory_space<vmem>>, vector<1x2x32xf32>
    %86 = vector.shape_cast %85 : vector<1x2x32xf32> to vector<2x32xf32>
    %87 = vector.shape_cast %84 : vector<2x32xf32> to vector<1x2x32xf32>
    tpu.vector_store %arg6[%c2, %c0_29, %c0_30], %87 {strides = array<i32>} : memref<8x2x64xf32, #tpu.memory_space<vmem>>, vector<1x2x32xf32>,
    %88 = vector.extract_strided_slice %83 {offsets = [0, 32], sizes = [2, 32], strides = [1, 1]} : vector<2x64xf32> to vector<2x32xf32>
    %c5 = arith.constant 5 : index
    %c0_31 = arith.constant 0 : index
    %c32_32 = arith.constant 32 : index
    %89 = vector.load %arg6[%c5, %c0_31, %c32_32] : memref<8x2x64xf32, #tpu.memory_space<vmem>>, vector<1x2x32xf32>
    %90 = vector.shape_cast %89 : vector<1x2x32xf32> to vector<2x32xf32>
    %91 = vector.shape_cast %88 : vector<2x32xf32> to vector<1x2x32xf32>
    tpu.vector_store %arg6[%c5, %c0_31, %c32_32], %91 {strides = array<i32>} : memref<8x2x64xf32, #tpu.memory_space<vmem>>, vector<1x2x32xf32>,
    %92 = vector.extract_strided_slice %5 {offsets = [6, 0], sizes = [2, 256], strides = [1, 1]} : vector<16x256xf32> to vector<2x256xf32>
    %c0_33 = arith.constant 0 : index
    %c0_34 = arith.constant 0 : index
    %93 = vector.load %arg2[%c0_33, %c0_34] : memref<64x256xf32, #tpu.memory_space<vmem>>, vector<64x256xf32>
    %cst_35 = arith.constant dense<0.000000e+00> : vector<2x256xf32>
    %94 = tpu.matmul %83, %93, %cst_35 {dimension_numbers = #tpu.dot_dimension_numbers<[1], [0], [0], [1], [0, 0, 1, 1], [], []>} : vector<2x64xf32>, vector<64x256xf32>, vector<2x256xf32> -> vector<2x256xf32>
    %95 = arith.addf %92, %94 : vector<2x256xf32>
    %96 = vector.extract_strided_slice %95 {offsets = [0, 0], sizes = [2, 192], strides = [1, 1]} : vector<2x256xf32> to vector<2x192xf32>
    %97 = arith.negf %96 : vector<2x192xf32>
    %98 = math.exp %97 : vector<2x192xf32>
    %cst_36 = arith.constant 1.000000e+00 : f32
    %99 = vector.broadcast %cst_36 : f32 to vector<2x192xf32>
    %100 = arith.addf %99, %98 : vector<2x192xf32>
    %101 = arith.divf %99, %100 : vector<2x192xf32>
    %102 = vector.extract_strided_slice %101 {offsets = [0, 0], sizes = [2, 64], strides = [1, 1]} : vector<2x192xf32> to vector<2x64xf32>
    %103 = vector.extract_strided_slice %101 {offsets = [0, 64], sizes = [2, 64], strides = [1, 1]} : vector<2x192xf32> to vector<2x64xf32>
    %104 = vector.extract_strided_slice %101 {offsets = [0, 128], sizes = [2, 64], strides = [1, 1]} : vector<2x192xf32> to vector<2x64xf32>
    %105 = vector.extract_strided_slice %95 {offsets = [0, 192], sizes = [2, 64], strides = [1, 1]} : vector<2x256xf32> to vector<2x64xf32>
    %106 = math.tanh %105 : vector<2x64xf32>
    %107 = arith.mulf %102, %81 : vector<2x64xf32>
    %108 = arith.mulf %103, %106 : vector<2x64xf32>
    %109 = arith.addf %107, %108 : vector<2x64xf32>
    %110 = math.tanh %109 : vector<2x64xf32>
    %111 = arith.mulf %104, %110 : vector<2x64xf32>
    %112 = vector.extract_strided_slice %111 {offsets = [0, 0], sizes = [2, 32], strides = [1, 1]} : vector<2x64xf32> to vector<2x32xf32>
    %c3 = arith.constant 3 : index
    %c0_37 = arith.constant 0 : index
    %c0_38 = arith.constant 0 : index
    %113 = vector.load %arg6[%c3, %c0_37, %c0_38] : memref<8x2x64xf32, #tpu.memory_space<vmem>>, vector<1x2x32xf32>
    %114 = vector.shape_cast %113 : vector<1x2x32xf32> to vector<2x32xf32>
    %115 = vector.shape_cast %112 : vector<2x32xf32> to vector<1x2x32xf32>
    tpu.vector_store %arg6[%c3, %c0_37, %c0_38], %115 {strides = array<i32>} : memref<8x2x64xf32, #tpu.memory_space<vmem>>, vector<1x2x32xf32>,
    %116 = vector.extract_strided_slice %111 {offsets = [0, 32], sizes = [2, 32], strides = [1, 1]} : vector<2x64xf32> to vector<2x32xf32>
    %c4 = arith.constant 4 : index
    %c0_39 = arith.constant 0 : index
    %c32_40 = arith.constant 32 : index
    %117 = vector.load %arg6[%c4, %c0_39, %c32_40] : memref<8x2x64xf32, #tpu.memory_space<vmem>>, vector<1x2x32xf32>
    %118 = vector.shape_cast %117 : vector<1x2x32xf32> to vector<2x32xf32>
    %119 = vector.shape_cast %116 : vector<2x32xf32> to vector<1x2x32xf32>
    tpu.vector_store %arg6[%c4, %c0_39, %c32_40], %119 {strides = array<i32>} : memref<8x2x64xf32, #tpu.memory_space<vmem>>, vector<1x2x32xf32>,
    %120 = vector.extract_strided_slice %5 {offsets = [8, 0], sizes = [2, 256], strides = [1, 1]} : vector<16x256xf32> to vector<2x256xf32>
    %c0_41 = arith.constant 0 : index
    %c0_42 = arith.constant 0 : index
    %121 = vector.load %arg2[%c0_41, %c0_42] : memref<64x256xf32, #tpu.memory_space<vmem>>, vector<64x256xf32>
    %cst_43 = arith.constant dense<0.000000e+00> : vector<2x256xf32>
    %122 = tpu.matmul %111, %121, %cst_43 {dimension_numbers = #tpu.dot_dimension_numbers<[1], [0], [0], [1], [0, 0, 1, 1], [], []>} : vector<2x64xf32>, vector<64x256xf32>, vector<2x256xf32> -> vector<2x256xf32>
    %123 = arith.addf %120, %122 : vector<2x256xf32>
    %124 = vector.extract_strided_slice %123 {offsets = [0, 0], sizes = [2, 192], strides = [1, 1]} : vector<2x256xf32> to vector<2x192xf32>
    %125 = arith.negf %124 : vector<2x192xf32>
    %126 = math.exp %125 : vector<2x192xf32>
    %cst_44 = arith.constant 1.000000e+00 : f32
    %127 = vector.broadcast %cst_44 : f32 to vector<2x192xf32>
    %128 = arith.addf %127, %126 : vector<2x192xf32>
    %129 = arith.divf %127, %128 : vector<2x192xf32>
    %130 = vector.extract_strided_slice %129 {offsets = [0, 0], sizes = [2, 64], strides = [1, 1]} : vector<2x192xf32> to vector<2x64xf32>
    %131 = vector.extract_strided_slice %129 {offsets = [0, 64], sizes = [2, 64], strides = [1, 1]} : vector<2x192xf32> to vector<2x64xf32>
    %132 = vector.extract_strided_slice %129 {offsets = [0, 128], sizes = [2, 64], strides = [1, 1]} : vector<2x192xf32> to vector<2x64xf32>
    %133 = vector.extract_strided_slice %123 {offsets = [0, 192], sizes = [2, 64], strides = [1, 1]} : vector<2x256xf32> to vector<2x64xf32>
    %134 = math.tanh %133 : vector<2x64xf32>
    %135 = arith.mulf %130, %109 : vector<2x64xf32>
    %136 = arith.mulf %131, %134 : vector<2x64xf32>
    %137 = arith.addf %135, %136 : vector<2x64xf32>
    %138 = math.tanh %137 : vector<2x64xf32>
    %139 = arith.mulf %132, %138 : vector<2x64xf32>
    %140 = vector.extract_strided_slice %139 {offsets = [0, 0], sizes = [2, 32], strides = [1, 1]} : vector<2x64xf32> to vector<2x32xf32>
    %c4_45 = arith.constant 4 : index
    %c0_46 = arith.constant 0 : index
    %c0_47 = arith.constant 0 : index
    %141 = vector.load %arg6[%c4_45, %c0_46, %c0_47] : memref<8x2x64xf32, #tpu.memory_space<vmem>>, vector<1x2x32xf32>
    %142 = vector.shape_cast %141 : vector<1x2x32xf32> to vector<2x32xf32>
    %143 = vector.shape_cast %140 : vector<2x32xf32> to vector<1x2x32xf32>
    tpu.vector_store %arg6[%c4_45, %c0_46, %c0_47], %143 {strides = array<i32>} : memref<8x2x64xf32, #tpu.memory_space<vmem>>, vector<1x2x32xf32>,
    %144 = vector.extract_strided_slice %139 {offsets = [0, 32], sizes = [2, 32], strides = [1, 1]} : vector<2x64xf32> to vector<2x32xf32>
    %c3_48 = arith.constant 3 : index
    %c0_49 = arith.constant 0 : index
    %c32_50 = arith.constant 32 : index
    %145 = vector.load %arg6[%c3_48, %c0_49, %c32_50] : memref<8x2x64xf32, #tpu.memory_space<vmem>>, vector<1x2x32xf32>
    %146 = vector.shape_cast %145 : vector<1x2x32xf32> to vector<2x32xf32>
    %147 = vector.shape_cast %144 : vector<2x32xf32> to vector<1x2x32xf32>
    tpu.vector_store %arg6[%c3_48, %c0_49, %c32_50], %147 {strides = array<i32>} : memref<8x2x64xf32, #tpu.memory_space<vmem>>, vector<1x2x32xf32>,
    %148 = vector.extract_strided_slice %5 {offsets = [10, 0], sizes = [2, 256], strides = [1, 1]} : vector<16x256xf32> to vector<2x256xf32>
    %c0_51 = arith.constant 0 : index
    %c0_52 = arith.constant 0 : index
    %149 = vector.load %arg2[%c0_51, %c0_52] : memref<64x256xf32, #tpu.memory_space<vmem>>, vector<64x256xf32>
    %cst_53 = arith.constant dense<0.000000e+00> : vector<2x256xf32>
    %150 = tpu.matmul %139, %149, %cst_53 {dimension_numbers = #tpu.dot_dimension_numbers<[1], [0], [0], [1], [0, 0, 1, 1], [], []>} : vector<2x64xf32>, vector<64x256xf32>, vector<2x256xf32> -> vector<2x256xf32>
    %151 = arith.addf %148, %150 : vector<2x256xf32>
    %152 = vector.extract_strided_slice %151 {offsets = [0, 0], sizes = [2, 192], strides = [1, 1]} : vector<2x256xf32> to vector<2x192xf32>
    %153 = arith.negf %152 : vector<2x192xf32>
    %154 = math.exp %153 : vector<2x192xf32>
    %cst_54 = arith.constant 1.000000e+00 : f32
    %155 = vector.broadcast %cst_54 : f32 to vector<2x192xf32>
    %156 = arith.addf %155, %154 : vector<2x192xf32>
    %157 = arith.divf %155, %156 : vector<2x192xf32>
    %158 = vector.extract_strided_slice %157 {offsets = [0, 0], sizes = [2, 64], strides = [1, 1]} : vector<2x192xf32> to vector<2x64xf32>
    %159 = vector.extract_strided_slice %157 {offsets = [0, 64], sizes = [2, 64], strides = [1, 1]} : vector<2x192xf32> to vector<2x64xf32>
    %160 = vector.extract_strided_slice %157 {offsets = [0, 128], sizes = [2, 64], strides = [1, 1]} : vector<2x192xf32> to vector<2x64xf32>
    %161 = vector.extract_strided_slice %151 {offsets = [0, 192], sizes = [2, 64], strides = [1, 1]} : vector<2x256xf32> to vector<2x64xf32>
    %162 = math.tanh %161 : vector<2x64xf32>
    %163 = arith.mulf %158, %137 : vector<2x64xf32>
    %164 = arith.mulf %159, %162 : vector<2x64xf32>
    %165 = arith.addf %163, %164 : vector<2x64xf32>
    %166 = math.tanh %165 : vector<2x64xf32>
    %167 = arith.mulf %160, %166 : vector<2x64xf32>
    %168 = vector.extract_strided_slice %167 {offsets = [0, 0], sizes = [2, 32], strides = [1, 1]} : vector<2x64xf32> to vector<2x32xf32>
    %c5_55 = arith.constant 5 : index
    %c0_56 = arith.constant 0 : index
    %c0_57 = arith.constant 0 : index
    %169 = vector.load %arg6[%c5_55, %c0_56, %c0_57] : memref<8x2x64xf32, #tpu.memory_space<vmem>>, vector<1x2x32xf32>
    %170 = vector.shape_cast %169 : vector<1x2x32xf32> to vector<2x32xf32>
    %171 = vector.shape_cast %168 : vector<2x32xf32> to vector<1x2x32xf32>
    tpu.vector_store %arg6[%c5_55, %c0_56, %c0_57], %171 {strides = array<i32>} : memref<8x2x64xf32, #tpu.memory_space<vmem>>, vector<1x2x32xf32>,
    %172 = vector.extract_strided_slice %167 {offsets = [0, 32], sizes = [2, 32], strides = [1, 1]} : vector<2x64xf32> to vector<2x32xf32>
    %c2_58 = arith.constant 2 : index
    %c0_59 = arith.constant 0 : index
    %c32_60 = arith.constant 32 : index
    %173 = vector.load %arg6[%c2_58, %c0_59, %c32_60] : memref<8x2x64xf32, #tpu.memory_space<vmem>>, vector<1x2x32xf32>
    %174 = vector.shape_cast %173 : vector<1x2x32xf32> to vector<2x32xf32>
    %175 = vector.shape_cast %172 : vector<2x32xf32> to vector<1x2x32xf32>
    tpu.vector_store %arg6[%c2_58, %c0_59, %c32_60], %175 {strides = array<i32>} : memref<8x2x64xf32, #tpu.memory_space<vmem>>, vector<1x2x32xf32>,
    %176 = vector.extract_strided_slice %5 {offsets = [12, 0], sizes = [2, 256], strides = [1, 1]} : vector<16x256xf32> to vector<2x256xf32>
    %c0_61 = arith.constant 0 : index
    %c0_62 = arith.constant 0 : index
    %177 = vector.load %arg2[%c0_61, %c0_62] : memref<64x256xf32, #tpu.memory_space<vmem>>, vector<64x256xf32>
    %cst_63 = arith.constant dense<0.000000e+00> : vector<2x256xf32>
    %178 = tpu.matmul %167, %177, %cst_63 {dimension_numbers = #tpu.dot_dimension_numbers<[1], [0], [0], [1], [0, 0, 1, 1], [], []>} : vector<2x64xf32>, vector<64x256xf32>, vector<2x256xf32> -> vector<2x256xf32>
    %179 = arith.addf %176, %178 : vector<2x256xf32>
    %180 = vector.extract_strided_slice %179 {offsets = [0, 0], sizes = [2, 192], strides = [1, 1]} : vector<2x256xf32> to vector<2x192xf32>
    %181 = arith.negf %180 : vector<2x192xf32>
    %182 = math.exp %181 : vector<2x192xf32>
    %cst_64 = arith.constant 1.000000e+00 : f32
    %183 = vector.broadcast %cst_64 : f32 to vector<2x192xf32>
    %184 = arith.addf %183, %182 : vector<2x192xf32>
    %185 = arith.divf %183, %184 : vector<2x192xf32>
    %186 = vector.extract_strided_slice %185 {offsets = [0, 0], sizes = [2, 64], strides = [1, 1]} : vector<2x192xf32> to vector<2x64xf32>
    %187 = vector.extract_strided_slice %185 {offsets = [0, 64], sizes = [2, 64], strides = [1, 1]} : vector<2x192xf32> to vector<2x64xf32>
    %188 = vector.extract_strided_slice %185 {offsets = [0, 128], sizes = [2, 64], strides = [1, 1]} : vector<2x192xf32> to vector<2x64xf32>
    %189 = vector.extract_strided_slice %179 {offsets = [0, 192], sizes = [2, 64], strides = [1, 1]} : vector<2x256xf32> to vector<2x64xf32>
    %190 = math.tanh %189 : vector<2x64xf32>
    %191 = arith.mulf %186, %165 : vector<2x64xf32>
    %192 = arith.mulf %187, %190 : vector<2x64xf32>
    %193 = arith.addf %191, %192 : vector<2x64xf32>
    %194 = math.tanh %193 : vector<2x64xf32>
    %195 = arith.mulf %188, %194 : vector<2x64xf32>
    %196 = vector.extract_strided_slice %195 {offsets = [0, 0], sizes = [2, 32], strides = [1, 1]} : vector<2x64xf32> to vector<2x32xf32>
    %c6_65 = arith.constant 6 : index
    %c0_66 = arith.constant 0 : index
    %c0_67 = arith.constant 0 : index
    %197 = vector.load %arg6[%c6_65, %c0_66, %c0_67] : memref<8x2x64xf32, #tpu.memory_space<vmem>>, vector<1x2x32xf32>
    %198 = vector.shape_cast %197 : vector<1x2x32xf32> to vector<2x32xf32>
    %199 = vector.shape_cast %196 : vector<2x32xf32> to vector<1x2x32xf32>
    tpu.vector_store %arg6[%c6_65, %c0_66, %c0_67], %199 {strides = array<i32>} : memref<8x2x64xf32, #tpu.memory_space<vmem>>, vector<1x2x32xf32>,
    %200 = vector.extract_strided_slice %195 {offsets = [0, 32], sizes = [2, 32], strides = [1, 1]} : vector<2x64xf32> to vector<2x32xf32>
    %c1_68 = arith.constant 1 : index
    %c0_69 = arith.constant 0 : index
    %c32_70 = arith.constant 32 : index
    %201 = vector.load %arg6[%c1_68, %c0_69, %c32_70] : memref<8x2x64xf32, #tpu.memory_space<vmem>>, vector<1x2x32xf32>
    %202 = vector.shape_cast %201 : vector<1x2x32xf32> to vector<2x32xf32>
    %203 = vector.shape_cast %200 : vector<2x32xf32> to vector<1x2x32xf32>
    tpu.vector_store %arg6[%c1_68, %c0_69, %c32_70], %203 {strides = array<i32>} : memref<8x2x64xf32, #tpu.memory_space<vmem>>, vector<1x2x32xf32>,
    %204 = vector.extract_strided_slice %5 {offsets = [14, 0], sizes = [2, 256], strides = [1, 1]} : vector<16x256xf32> to vector<2x256xf32>
    %c0_71 = arith.constant 0 : index
    %c0_72 = arith.constant 0 : index
    %205 = vector.load %arg2[%c0_71, %c0_72] : memref<64x256xf32, #tpu.memory_space<vmem>>, vector<64x256xf32>
    %cst_73 = arith.constant dense<0.000000e+00> : vector<2x256xf32>
    %206 = tpu.matmul %195, %205, %cst_73 {dimension_numbers = #tpu.dot_dimension_numbers<[1], [0], [0], [1], [0, 0, 1, 1], [], []>} : vector<2x64xf32>, vector<64x256xf32>, vector<2x256xf32> -> vector<2x256xf32>
    %207 = arith.addf %204, %206 : vector<2x256xf32>
    %208 = vector.extract_strided_slice %207 {offsets = [0, 0], sizes = [2, 192], strides = [1, 1]} : vector<2x256xf32> to vector<2x192xf32>
    %209 = arith.negf %208 : vector<2x192xf32>
    %210 = math.exp %209 : vector<2x192xf32>
    %cst_74 = arith.constant 1.000000e+00 : f32
    %211 = vector.broadcast %cst_74 : f32 to vector<2x192xf32>
    %212 = arith.addf %211, %210 : vector<2x192xf32>
    %213 = arith.divf %211, %212 : vector<2x192xf32>
    %214 = vector.extract_strided_slice %213 {offsets = [0, 0], sizes = [2, 64], strides = [1, 1]} : vector<2x192xf32> to vector<2x64xf32>
    %215 = vector.extract_strided_slice %213 {offsets = [0, 64], sizes = [2, 64], strides = [1, 1]} : vector<2x192xf32> to vector<2x64xf32>
    %216 = vector.extract_strided_slice %213 {offsets = [0, 128], sizes = [2, 64], strides = [1, 1]} : vector<2x192xf32> to vector<2x64xf32>
    %217 = vector.extract_strided_slice %207 {offsets = [0, 192], sizes = [2, 64], strides = [1, 1]} : vector<2x256xf32> to vector<2x64xf32>
    %218 = math.tanh %217 : vector<2x64xf32>
    %219 = arith.mulf %214, %193 : vector<2x64xf32>
    %220 = arith.mulf %215, %218 : vector<2x64xf32>
    %221 = arith.addf %219, %220 : vector<2x64xf32>
    %222 = math.tanh %221 : vector<2x64xf32>
    %223 = arith.mulf %216, %222 : vector<2x64xf32>
    %224 = vector.extract_strided_slice %223 {offsets = [0, 0], sizes = [2, 32], strides = [1, 1]} : vector<2x64xf32> to vector<2x32xf32>
    %c7_75 = arith.constant 7 : index
    %c0_76 = arith.constant 0 : index
    %c0_77 = arith.constant 0 : index
    %225 = vector.load %arg6[%c7_75, %c0_76, %c0_77] : memref<8x2x64xf32, #tpu.memory_space<vmem>>, vector<1x2x32xf32>
    %226 = vector.shape_cast %225 : vector<1x2x32xf32> to vector<2x32xf32>
    %227 = vector.shape_cast %224 : vector<2x32xf32> to vector<1x2x32xf32>
    tpu.vector_store %arg6[%c7_75, %c0_76, %c0_77], %227 {strides = array<i32>} : memref<8x2x64xf32, #tpu.memory_space<vmem>>, vector<1x2x32xf32>,
    %228 = vector.extract_strided_slice %223 {offsets = [0, 32], sizes = [2, 32], strides = [1, 1]} : vector<2x64xf32> to vector<2x32xf32>
    %c0_78 = arith.constant 0 : index
    %c0_79 = arith.constant 0 : index
    %c32_80 = arith.constant 32 : index
    %229 = vector.load %arg6[%c0_78, %c0_79, %c32_80] : memref<8x2x64xf32, #tpu.memory_space<vmem>>, vector<1x2x32xf32>
    %230 = vector.shape_cast %229 : vector<1x2x32xf32> to vector<2x32xf32>
    %231 = vector.shape_cast %228 : vector<2x32xf32> to vector<1x2x32xf32>
    tpu.vector_store %arg6[%c0_78, %c0_79, %c32_80], %231 {strides = array<i32>} : memref<8x2x64xf32, #tpu.memory_space<vmem>>, vector<1x2x32xf32>,
    %c0_81 = arith.constant 0 : index
    %c0_82 = arith.constant 0 : index
    %232 = vector.load %arg7[%c0_81, %c0_82] : memref<2x64xf32, #tpu.memory_space<vmem>>, vector<2x64xf32>
    tpu.vector_store %arg7[%c0_81, %c0_82], %223 {strides = array<i32>} : memref<2x64xf32, #tpu.memory_space<vmem>>, vector<2x64xf32>,
    %c0_83 = arith.constant 0 : index
    %c0_84 = arith.constant 0 : index
    %233 = vector.load %arg8[%c0_83, %c0_84] : memref<2x64xf32, #tpu.memory_space<vmem>>, vector<2x64xf32>
    tpu.vector_store %arg8[%c0_83, %c0_84], %221 {strides = array<i32>} : memref<2x64xf32, #tpu.memory_space<vmem>>, vector<2x64xf32>,
    return
  }
}

</mosaic_0001>

<bundles_post_ra>
// kernel: encoder_forward.1
= control target key start
LH: loop header
LB: loop body
LE: loop exit
PB: predicated region body
PF: predicated region fallthrough
CT: control target
= control target key end

     0   :  { %v1470_v7 = vmov 0.0   ;;  %s1811_s0 = inlined_call_operand.vmem [shape: f32[16,64], index: 0, kind: input, shape index: {}]   ;;  %s1812_s1 = inlined_call_operand.vmem [shape: f32[64,256], index: 1, kind: input, shape index: {}]   ;;  %s1813_s2 = inlined_call_operand.vmem [shape: f32[64,256], index: 2, kind: input, shape index: {}]   ;;  %s1814_s3 = inlined_call_operand.vmem [shape: f32[1,256], index: 3, kind: input, shape index: {}]   ;;  %s1815_s4 = inlined_call_operand.vmem [shape: f32[2,64], index: 4, kind: input, shape index: {}]   ;;  %s1816_s5 = inlined_call_operand.vmem [shape: f32[2,64], index: 5, kind: input, shape index: {}]   ;;  %s1817_s6 = inlined_call_operand.hbm [shape: f32[8,2,64], index: 6, kind: output, shape index: {0}]   ;;  %s1818_s7 = inlined_call_operand.vmem [shape: f32[2,64], index: 7, kind: output, shape index: {1}]   ;;  %s1819_s8 = inlined_call_operand.vmem [shape: f32[2,64], index: 8, kind: output, shape index: {2}]  }
   0x1   :  { %v30_v0 = vld [vmem:[%s1812_s1 + $0x8] sm:$0xff]  ;;  %v32_v1 = vld [vmem:[%s1812_s1 + $0x18] sm:$0xff]  ;;  %v29_v2 = vld [vmem:[%s1812_s1] sm:$0xff]  ;;  %128 = vmatprep.mubr.f32.mxu0 %v1470_v7  ;;  %226 = vmatprep.mubr.f32.mxu1 %v1470_v7 }
   0x2   :  { %v1201_v3 = vpack.c.bf16 %v32_v1, %v30_v0  ;;  %v31_v4 = vld [vmem:[%s1812_s1 + $0x10] sm:$0xff]  ;;  %v144_v5 = vld [vmem:[%s1813_s2 + $0x8] sm:$0xff]  ;;  %v146_v6 = vld [vmem:[%s1813_s2 + $0x18] sm:$0xff] }
   0x3   :  { %v1203_v8 = vpack.c.bf16 %v31_v4, %v29_v2  ;;  %v1540_v9 = vpack.c.bf16 %v146_v6, %v144_v5  ;;  %v143_v10 = vld [vmem:[%s1813_s2] sm:$0xff]  ;;  %v145_v11 = vld [vmem:[%s1813_s2 + $0x10] sm:$0xff]  ;;  %v34_v12 = vld [vmem:[%s1812_s1 + $0x28] sm:$0xff] }
   0x4   :  { %1202 = vmatprep.subr.bf16.mxu0 %v1201_v3  ;;  %v1551_v13 = vpack.c.bf16 %v145_v11, %v143_v10  ;;  %v36_v14 = vld [vmem:[%s1812_s1 + $0x38] sm:$0xff]  ;;  %v33_v15 = vld [vmem:[%s1812_s1 + $0x20] sm:$0xff]  ;;  %v35_v16 = vld [vmem:[%s1812_s1 + $0x30] sm:$0xff] }
   0x5   :  { %1204 = vmatpush1.bf16.msra.mxu0 %v1203_v8  ;;  %1218 = vmatprep.subr.bf16.mxu1 %v1540_v9  ;;  %v1205_v17 = vpack.c.bf16 %v36_v14, %v34_v12  ;;  %v1207_v18 = vpack.c.bf16 %v35_v16, %v33_v15  ;;  %v148_v19 = vld [vmem:[%s1813_s2 + $0x28] sm:$0xff]  ;;  %v150_v20 = vld [vmem:[%s1813_s2 + $0x38] sm:$0xff]  ;;  %v147_v21 = vld [vmem:[%s1813_s2 + $0x20] sm:$0xff] }
   0x6   :  { %1220 = vmatpush1.bf16.msra.mxu1 %v1551_v13  ;;  %v1573_v22 = vpack.c.bf16 %v150_v20, %v148_v19  ;;  %v149_v23 = vld [vmem:[%s1813_s2 + $0x30] sm:$0xff]  ;;  %v38_v24 = vld [vmem:[%s1812_s1 + $0x48] sm:$0xff]  ;;  %v40_v25 = vld [vmem:[%s1812_s1 + $0x58] sm:$0xff] }
   0x7   :  { %1206 = vmatprep.subr.bf16.mxu0 %v1205_v17  ;;  %v1584_v26 = vpack.c.bf16 %v149_v23, %v147_v21  ;;  %v1209_v27 = vpack.c.bf16 %v40_v25, %v38_v24  ;;  %v37_v28 = vld [vmem:[%s1812_s1 + $0x40] sm:$0xff]  ;;  %v39_v29 = vld [vmem:[%s1812_s1 + $0x50] sm:$0xff]  ;;  %v152_v30 = vld [vmem:[%s1813_s2 + $0x48] sm:$0xff] }
   0x8   :  { %1222 = vmatprep.subr.bf16.mxu1 %v1573_v22  ;;  %v154_v31 = vld [vmem:[%s1813_s2 + $0x58] sm:$0xff]  ;;  %v151_v32 = vld [vmem:[%s1813_s2 + $0x40] sm:$0xff]  ;;  %v153_v33 = vld [vmem:[%s1813_s2 + $0x50] sm:$0xff]  ;;  %v1211_v34 = vpack.c.bf16 %v39_v29, %v37_v28 }
   0x9   :  { %1208 = vmatpush1.bf16.msra.mxu0 %v1207_v18  ;;  %v1605_v35 = vpack.c.bf16 %v154_v31, %v152_v30  ;;  %v42_v36 = vld [vmem:[%s1812_s1 + $0x68] sm:$0xff]  ;;  %v44_v37 = vld [vmem:[%s1812_s1 + $0x78] sm:$0xff]  ;;  %v41_v38 = vld [vmem:[%s1812_s1 + $0x60] sm:$0xff]  ;;  %v1617_v39 = vpack.c.bf16 %v153_v33, %v151_v32 }
   0xa   :  { %1224 = vmatpush1.bf16.msra.mxu1 %v1584_v26  ;;  %1210 = vmatprep.subr.bf16.mxu0 %v1209_v27  ;;  %v1213_v40 = vpack.c.bf16 %v44_v37, %v42_v36  ;;  %v43_v41 = vld [vmem:[%s1812_s1 + $0x70] sm:$0xff]  ;;  %v156_v42 = vld [vmem:[%s1813_s2 + $0x68] sm:$0xff]  ;;  %v158_v43 = vld [vmem:[%s1813_s2 + $0x78] sm:$0xff] }
   0xb   :  { %1226 = vmatprep.subr.bf16.mxu1 %v1605_v35  ;;  %v1629_v44 = vpack.c.bf16 %v158_v43, %v156_v42  ;;  %v155_v45 = vld [vmem:[%s1813_s2 + $0x60] sm:$0xff]  ;;  %v157_v46 = vld [vmem:[%s1813_s2 + $0x70] sm:$0xff] }
   0xc   :  { %14 = vsyncpa [#allocation3], 0  ;;  %v1215_v47 = vpack.c.bf16 %v43_v41, %v41_v38  ;;  %v1638_v48 = vpack.c.bf16 %v157_v46, %v155_v45  ;;  %v27_v49 = vld [vmem:[%s1811_s0] sm:$0xff]  ;;  %vm57_vm0 = vcmask 523264   ;;  %v47_v51 = vlaneseq  ;;  %v28_v6 = vld [vmem:[%s1811_s0 + $0x8] sm:$0xff]  ;;  %s1471_s29 = smov 64  }
   0xd   :  { %1212 = vmatpush1.bf16.msra.mxu0 %v1211_v34  ;;  %v141_v50 = vld [vmem:[%s1815_s4] sm:$0x3]  ;;  %vm257_vm1 = vcmask 254976   ;;  %vm260_vm2 = vcmask 517376   ;;  %vm386_vm3 = vcmask 257026   ;;  %vm389_vm4 = vcmask 519426  }
   0xe   :  { %1228 = vmatpush1.bf16.msra.mxu1 %v1617_v39  ;;  %1214 = vmatprep.subr.bf16.mxu0 %v1213_v40  ;;  %v48_v52 = vshrl.u32 %v47_v51, 7  ;;  %v45_v54 = vld [vmem:[%s1814_s3] sm:$0x3]  ;;  %vm516_vm5 = vcmask 259076   ;;  %vm519_vm6 = vcmask 521476   ;;  %vm646_vm7 = vcmask 261126  }
   0xf   :  { %1230 = vmatprep.subr.bf16.mxu1 %v1629_v44  ;;  %v142_v14 = vld [vmem:[%s1816_s5] sm:$0x3]  ;;  %vm649_vm8 = vcmask 523526   ;;  %vm1148_vm9 = vcmask 523270   ;;  %s1472_s10 = smov [#allocation2]  }
  0x10   :  { %v49_v53 = vsub.s32 0, %v48_v52  ;;  %v53_v61 = vsub.s32 1, %v48_v52  ;;  %s1156_s11 = sshll.u32 %s1472_s10, 4  ;;  %s1157_s11 = int_to_ptr.vmem [resolvable:$true] %s1156_s11 }
  0x11   :  { %1216 = vmatpush1.bf16.msra.mxu0 %v1215_v47  ;;  %s1446_s14 = scalar_lea.vmem %s1157_s11, 256  ;;  %p1451_p1 = scmp.lt.s32.totalorder %s1157_s11, %s1157_s11 }
  0x12   :  { %1232 = vmatpush1.bf16.msra.mxu1 %v1638_v48  ;;  %1234 = vmatprep.subr.bf16.mxu0 %v1540_v9  ;;  %v1673_v55 = vrot.slane %v45_v54, %v49_v53  ;;  %v1679_v0 = vrot.slane %v45_v54, %v53_v61  ;;  %p1447_p0 = scmp.ne.s32.totalorder %s1157_s11, %s1446_s14  ;;  %p1452_p2 = scmp.lt.s32.totalorder %s1446_s14, %s1446_s14 }
  0x13   :  { %1250 = vmatprep.subr.bf16.mxu1 %v1540_v9 }
  0x14   :  { %1175 = vmatmul.mubr.msk.f32.vlgmr.msra.gmra.mrb[0].mxu0 %vm57_vm0, %v27_v49  ;;  %p1453_p3 = por %p1452_p2, %p1451_p1 }
  0x15   :  { %1177 = vmatmul.mubr.msk.f32.vlgmr.msra.gmra.mrb[0].mxu1 %vm57_vm0, %v141_v50  ;;  %1236 = vmatpush1.bf16.msra.mxu0 %v1551_v13 }
  0x16   :  { %1238 = vmatprep.subr.bf16.mxu0 %v1573_v22  ;;  %134 = vmatprep.mubr.f32.mxu0 %v1470_v7  ;;  %p1454_p4 = pnand %p1453_p3, %p1447_p0 }
  0x17   :  { %1252 = vmatpush1.bf16.msra.mxu1 %v1551_v13  ;;  %475 = vmatprep.mubr.f32.mxu1 %v1470_v7 }
  0x18   :  { %1254 = vmatprep.subr.bf16.mxu1 %v1573_v22  ;;  %1176 = vmatmul.mubr.msk.f32.gmra.mrb[2].mxu0 %vm57_vm0, %v28_v6 }
  0x19   :  { %1240 = vmatpush1.bf16.msra.mxu0 %v1584_v26  ;;  %345 = vmatprep.mubr.f32.mxu0 %v1470_v7 }
  0x1a   :  { %1242 = vmatprep.subr.bf16.mxu0 %v1605_v35 }
  0x1b   :  { %1256 = vmatpush1.bf16.msra.mxu1 %v1584_v26 }
  0x1c   :  { %1258 = vmatprep.subr.bf16.mxu1 %v1605_v35 }
  0x1d   :  { %1244 = vmatpush1.bf16.msra.mxu0 %v1617_v39 }
  0x1e   :  { %1246 = vmatprep.subr.bf16.mxu0 %v1629_v44 }
  0x1f   :  { %1260 = vmatpush1.bf16.msra.mxu1 %v1617_v39 }
  0x20   :  { %1262 = vmatprep.subr.bf16.mxu1 %v1629_v44 }
  0x21   :  { %1248 = vmatpush1.bf16.msra.mxu0 %v1638_v48 }
  0x22   :  { %1266 = vmatprep.subr.bf16.mxu0 %v1540_v9 }
  0x23   :  { %1264 = vmatpush1.bf16.msra.mxu1 %v1638_v48 }
  0x24   :  { %1282 = vmatprep.subr.bf16.mxu1 %v1540_v9 }
  0xe7   :  { %v130_v56 = vpop.f32.mrb[0].mxu0 }
  0xe8   :  { %v1676_v57 = vadd.f32 %v130_v56, %v1673_v55  ;;  %v132_v58 = vpop.f32.mrb[1].mxu0  ;;  %v228_v59 = vpop.f32.mrb[0].mxu1 }
  0xe9   :  { %v230_v60 = vpop.f32.mrb[1].mxu1  ;;  %v1682_v1 = vadd.f32 %v132_v58, %v1679_v0 }
  0xea   :  { %v233_v62 = vadd.f32 %v228_v59, %v1676_v57 }
  0xeb   :  { %v234_v2 = vadd.f32 %v230_v60, %v1682_v1  ;;  %v1706_v23 = vpop.f32.mrb[2].mxu0 }
  0xec   :  { %v1178_v63 = vmul.f32 -1.442695, %v233_v62  ;;  %v1708_v24 = vpop.f32.mrb[3].mxu0 }
  0xed   :  { %v1179_v11 = vmul.f32 -1.442695, %v234_v2 }
  0xee   :  { %1350 = vpow2.f32 %v1178_v63 }
  0xef   :  { %1352 = vtanh.f32 %v234_v2 }
  0xf8   :  { %v1351_v3 = vpop.eup %1350 }
  0xf9   :  { %v241_v4 = vadd.f32 1.0, %v1351_v3  ;;  %v1353_v5 = vpop.eup %1352 }
  0xfb   :  { %1354 = vrcp.f32 %v241_v4 }
  0xfc   :  { %1356 = vpow2.f32 %v1179_v11 }
 0x105   :  { %v1355_v8 = vpop.eup %1354 }
 0x106   :  { %v249_v10 = vmul.f32 %v1355_v8, %v1353_v5  ;;  %v1357_v12 = vpop.eup %1356  ;;  %v248_v16 = vmul.f32 %v1355_v8, %v142_v14 }
 0x107   :  { %v242_v15 = vadd.f32 1.0, %v1357_v12 }
 0x108   :  { %251 = vrot.lane.b32.xlu0 %v249_v10, %s1471_s29 }
 0x109   :  { %1358 = vrcp.f32 %v242_v15 }
 0x113   :  { %v1359_v19 = vpop.eup %1358 }
 0x17a   :  { %v252_v17 = vpop.permute.xlu0 %251 }
 0x17b   :  { %v254_v18 = vadd.f32 %v252_v17, %v248_v16 }
 0x17d   :  { %1360 = vtanh.f32 %v254_v18  ;;  %v374_v37 = vrot.slane %v254_v18, 6 }
 0x187   :  { %v1361_v20 = vpop.eup %1360 }
 0x188   :  { %v256_v21 = vmul.f32 %v1361_v20, %v1359_v19 }
 0x18a   :  { %1180 = vmatmul.mubr.msk.f32.vlgmr.msra.gmra.mrb[4].mxu0 %vm57_vm0, %v256_v21  ;;  %258 = vst.msk [vmem:[#allocation2] sm:$0x3] %vm257_vm1, %v256_v21 }
 0x18b   :  { %261 = vst.msk [vmem:[#allocation2 + $0xe] sm:$0x3] %vm260_vm2, %v256_v21  ;;  %1268 = vmatpush1.bf16.msra.mxu0 %v1551_v13  ;;  %605 = vmatprep.mubr.f32.mxu0 %v1470_v7 }
 0x18c   :  { %1270 = vmatprep.subr.bf16.mxu0 %v1573_v22 }
 0x18f   :  { %1272 = vmatpush1.bf16.msra.mxu0 %v1584_v26 }
 0x190   :  { %1274 = vmatprep.subr.bf16.mxu0 %v1605_v35 }
 0x193   :  { %1276 = vmatpush1.bf16.msra.mxu0 %v1617_v39 }
 0x194   :  { %1278 = vmatprep.subr.bf16.mxu0 %v1629_v44 }
 0x197   :  { %1280 = vmatpush1.bf16.msra.mxu0 %v1638_v48 }
 0x198   :  { %1298 = vmatprep.subr.bf16.mxu0 %v1540_v9 }
 0x25d   :  { %v347_v25 = vpop.f32.mrb[4].mxu0 }
 0x25e   :  { %v354_v27 = vrot.slane %v347_v25, 6  ;;  %v349_v28 = vpop.f32.mrb[5].mxu0 }
 0x25f   :  { %v355_v31 = vrot.slane %v349_v28, 6 }
 0x260   :  { %v358_v29 = vadd.f32 %v354_v27, %v1676_v57 }
 0x261   :  { %v359_v32 = vadd.f32 %v355_v31, %v1682_v1 }
 0x262   :  { %v1181_v30 = vmul.f32 -1.442695, %v358_v29 }
 0x263   :  { %v1182_v42 = vmul.f32 -1.442695, %v359_v32 }
 0x264   :  { %1362 = vpow2.f32 %v1181_v30 }
 0x265   :  { %1364 = vtanh.f32 %v359_v32 }
 0x26e   :  { %v1363_v33 = vpop.eup %1362 }
 0x26f   :  { %v366_v34 = vadd.f32 1.0, %v1363_v33  ;;  %v1365_v36 = vpop.eup %1364 }
 0x271   :  { %1366 = vrcp.f32 %v366_v34 }
 0x272   :  { %1368 = vpow2.f32 %v1182_v42 }
 0x27b   :  { %v1367_v38 = vpop.eup %1366 }
 0x27c   :  { %v377_v40 = vmul.f32 %v1367_v38, %v1365_v36  ;;  %v376_v41 = vmul.f32 %v1367_v38, %v374_v37  ;;  %v1369_v43 = vpop.eup %1368 }
 0x27d   :  { %v367_v45 = vadd.f32 1.0, %v1369_v43 }
 0x27e   :  { %379 = vrot.lane.b32.xlu0 %v377_v40, %s1471_s29 }
 0x27f   :  { %1370 = vrcp.f32 %v367_v45 }
 0x289   :  { %v1371_v49 = vpop.eup %1370 }
 0x2f0   :  { %v380_v46 = vpop.permute.xlu0 %379 }
 0x2f1   :  { %v382_v47 = vadd.f32 %v380_v46, %v376_v41  ;;  %v1756_v46 = vadd.f32 %v1706_v23, %v1673_v55 }
 0x2f3   :  { %1372 = vtanh.f32 %v382_v47  ;;  %v504_v3 = vrot.slane %v382_v47, 6 }
 0x2fd   :  { %v1373_v50 = vpop.eup %1372 }
 0x2fe   :  { %v384_v51 = vmul.f32 %v1373_v50, %v1371_v49 }
 0x300   :  { %387 = vst.msk [vmem:[#allocation2] sm:$0xc] %vm386_vm3, %v384_v51  ;;  %v408_v52 = vrot.slane %v384_v51, 2 }
 0x301   :  { %390 = vst.msk [vmem:[#allocation2 + $0xa] sm:$0xc] %vm389_vm4, %v384_v51 }
 0x302   :  { %1183 = vmatmul.mubr.msk.f32.vlgmr.msra.gmra.mrb[2].mxu1 %vm57_vm0, %v408_v52  ;;  %v1761_v52 = vadd.f32 %v1708_v24, %v1679_v0 }
 0x303   :  { %1284 = vmatpush1.bf16.msra.mxu1 %v1551_v13  ;;  %735 = vmatprep.mubr.f32.mxu1 %v1470_v7 }
 0x304   :  { %1286 = vmatprep.subr.bf16.mxu1 %v1573_v22 }
 0x307   :  { %1288 = vmatpush1.bf16.msra.mxu1 %v1584_v26 }
 0x308   :  { %1290 = vmatprep.subr.bf16.mxu1 %v1605_v35 }
 0x30b   :  { %1292 = vmatpush1.bf16.msra.mxu1 %v1617_v39 }
 0x30c   :  { %1294 = vmatprep.subr.bf16.mxu1 %v1629_v44 }
 0x30f   :  { %1296 = vmatpush1.bf16.msra.mxu1 %v1638_v48 }
 0x310   :  { %1314 = vmatprep.subr.bf16.mxu1 %v1540_v9 }
 0x3d5   :  { %v477_v53 = vpop.f32.mrb[2].mxu1 }
 0x3d6   :  { %v484_v54 = vrot.slane %v477_v53, 4  ;;  %v479_v56 = vpop.f32.mrb[3].mxu1 }
 0x3d7   :  { %v485_v60 = vrot.slane %v479_v56, 4 }
 0x3d8   :  { %v488_v58 = vadd.f32 %v484_v54, %v1676_v57 }
 0x3d9   :  { %v489_v61 = vadd.f32 %v485_v60, %v1682_v1 }
 0x3da   :  { %v1184_v59 = vmul.f32 -1.442695, %v488_v58 }
 0x3db   :  { %v1185_v8 = vmul.f32 -1.442695, %v489_v61 }
 0x3dc   :  { %1374 = vpow2.f32 %v1184_v59 }
 0x3dd   :  { %1376 = vtanh.f32 %v489_v61 }
 0x3e6   :  { %v1375_v62 = vpop.eup %1374 }
 0x3e7   :  { %v496_v63 = vadd.f32 1.0, %v1375_v62  ;;  %v1377_v2 = vpop.eup %1376 }
 0x3e9   :  { %1378 = vrcp.f32 %v496_v63 }
 0x3ea   :  { %1380 = vpow2.f32 %v1185_v8 }
 0x3f3   :  { %v1379_v4 = vpop.eup %1378 }
 0x3f4   :  { %v507_v5 = vmul.f32 %v1379_v4, %v1377_v2  ;;  %v506_v6 = vmul.f32 %v1379_v4, %v504_v3  ;;  %v1381_v10 = vpop.eup %1380 }
 0x3f5   :  { %v497_v11 = vadd.f32 1.0, %v1381_v10 }
 0x3f6   :  { %509 = vrot.lane.b32.xlu1 %v507_v5, %s1471_s29 }
 0x3f7   :  { %1382 = vrcp.f32 %v497_v11 }
 0x401   :  { %v1383_v15 = vpop.eup %1382 }
 0x468   :  { %v510_v12 = vpop.permute.xlu1 %509 }
 0x469   :  { %v512_v14 = vadd.f32 %v510_v12, %v506_v6 }
 0x46b   :  { %1384 = vtanh.f32 %v512_v14  ;;  %v634_v33 = vrot.slane %v512_v14, 6 }
 0x475   :  { %v1385_v16 = vpop.eup %1384 }
 0x476   :  { %v514_v17 = vmul.f32 %v1385_v16, %v1383_v15 }
 0x478   :  { %517 = vst.msk [vmem:[#allocation2] sm:$0x30] %vm516_vm5, %v514_v17  ;;  %v538_v18 = vrot.slane %v514_v17, 4 }
 0x479   :  { %520 = vst.msk [vmem:[#allocation2 + $0x6] sm:$0x30] %vm519_vm6, %v514_v17 }
 0x47a   :  { %1186 = vmatmul.mubr.msk.f32.vlgmr.msra.gmra.mrb[6].mxu0 %vm57_vm0, %v538_v18 }
 0x47b   :  { %1300 = vmatpush1.bf16.msra.mxu0 %v1551_v13  ;;  %854 = vmatprep.mubr.f32.mxu0 %v1470_v7 }
 0x47c   :  { %1302 = vmatprep.subr.bf16.mxu0 %v1573_v22 }
 0x47f   :  { %1304 = vmatpush1.bf16.msra.mxu0 %v1584_v26 }
 0x480   :  { %1306 = vmatprep.subr.bf16.mxu0 %v1605_v35 }
 0x483   :  { %1308 = vmatpush1.bf16.msra.mxu0 %v1617_v39 }
 0x484   :  { %1310 = vmatprep.subr.bf16.mxu0 %v1629_v44 }
 0x487   :  { %1312 = vmatpush1.bf16.msra.mxu0 %v1638_v48 }
 0x488   :  { %1330 = vmatprep.subr.bf16.mxu0 %v1540_v9 }
 0x54d   :  { %v607_v19 = vpop.f32.mrb[6].mxu0 }
 0x54e   :  { %v614_v20 = vrot.slane %v607_v19, 2  ;;  %v609_v21 = vpop.f32.mrb[7].mxu0 }
 0x54f   :  { %v615_v28 = vrot.slane %v609_v21, 2 }
 0x550   :  { %v618_v25 = vadd.f32 %v614_v20, %v1676_v57 }
 0x551   :  { %v619_v29 = vadd.f32 %v615_v28, %v1682_v1 }
 0x552   :  { %v1187_v27 = vmul.f32 -1.442695, %v618_v25 }
 0x553   :  { %v1188_v9 = vmul.f32 -1.442695, %v619_v29 }
 0x554   :  { %1386 = vpow2.f32 %v1187_v27 }
 0x555   :  { %1388 = vtanh.f32 %v619_v29 }
 0x55e   :  { %v1387_v30 = vpop.eup %1386 }
 0x55f   :  { %v626_v31 = vadd.f32 1.0, %v1387_v30  ;;  %v1389_v32 = vpop.eup %1388 }
 0x561   :  { %1390 = vrcp.f32 %v626_v31 }
 0x562   :  { %1392 = vpow2.f32 %v1188_v9 }
 0x56b   :  { %v1391_v34 = vpop.eup %1390 }
 0x56c   :  { %v637_v36 = vmul.f32 %v1391_v34, %v1389_v32  ;;  %v636_v37 = vmul.f32 %v1391_v34, %v634_v33  ;;  %v1393_v38 = vpop.eup %1392 }
 0x56d   :  { %v627_v57 = vadd.f32 1.0, %v1393_v38 }
 0x56e   :  { %639 = vrot.lane.b32.xlu1 %v637_v36, %s1471_s29 }
 0x56f   :  { %1394 = vrcp.f32 %v627_v57 }
 0x579   :  { %v1395_v1 = vpop.eup %1394 }
 0x5e0   :  { %v640_v40 = vpop.permute.xlu1 %639 }
 0x5e1   :  { %v642_v41 = vadd.f32 %v640_v40, %v636_v37 }
 0x5e3   :  { %1396 = vtanh.f32 %v642_v41  ;;  %v758_v59 = vrot.slane %v642_v41, 6 }
 0x5ed   :  { %v1397_v42 = vpop.eup %1396 }
 0x5ee   :  { %v644_v43 = vmul.f32 %v1397_v42, %v1395_v1 }
 0x5f0   :  { %v668_v45 = vrot.slane %v644_v43, 6  ;;  %647 = vst.msk [vmem:[#allocation2] sm:$0xc0] %vm646_vm7, %v644_v43 }
 0x5f1   :  { %650 = vst.msk [vmem:[#allocation2 + $0x2] sm:$0xc0] %vm649_vm8, %v644_v43 }
 0x5f2   :  { %1189 = vmatmul.mubr.msk.f32.vlgmr.msra.gmra.mrb[4].mxu1 %vm57_vm0, %v668_v45 }
 0x5f3   :  { %1316 = vmatpush1.bf16.msra.mxu1 %v1551_v13  ;;  %980 = vmatprep.mubr.f32.mxu1 %v1470_v7 }
 0x5f4   :  { %1318 = vmatprep.subr.bf16.mxu1 %v1573_v22 }
 0x5f7   :  { %1320 = vmatpush1.bf16.msra.mxu1 %v1584_v26 }
 0x5f8   :  { %1322 = vmatprep.subr.bf16.mxu1 %v1605_v35 }
 0x5fb   :  { %1324 = vmatpush1.bf16.msra.mxu1 %v1617_v39 }
 0x5fc   :  { %1326 = vmatprep.subr.bf16.mxu1 %v1629_v44 }
 0x5ff   :  { %1328 = vmatpush1.bf16.msra.mxu1 %v1638_v48 }
 0x6c5   :  { %v737_v47 = vpop.f32.mrb[4].mxu1 }
 0x6c6   :  { %v742_v49 = vadd.f32 %v737_v47, %v1756_v46  ;;  %v739_v50 = vpop.f32.mrb[5].mxu1 }
 0x6c7   :  { %v743_v53 = vadd.f32 %v739_v50, %v1761_v52 }
 0x6c8   :  { %v1190_v51 = vmul.f32 -1.442695, %v742_v49 }
 0x6c9   :  { %v1191_v61 = vmul.f32 -1.442695, %v743_v53 }
 0x6ca   :  { %1398 = vpow2.f32 %v1190_v51 }
 0x6cb   :  { %1400 = vtanh.f32 %v743_v53 }
 0x6d4   :  { %v1399_v54 = vpop.eup %1398 }
 0x6d5   :  { %v750_v56 = vadd.f32 1.0, %v1399_v54  ;;  %v1401_v58 = vpop.eup %1400 }
 0x6d7   :  { %1402 = vrcp.f32 %v750_v56 }
 0x6d8   :  { %1404 = vpow2.f32 %v1191_v61 }
 0x6e1   :  { %v1403_v55 = vpop.eup %1402 }
 0x6e2   :  { %v761_v23 = vmul.f32 %v1403_v55, %v1401_v58  ;;  %v760_v60 = vmul.f32 %v1403_v55, %v758_v59  ;;  %v1405_v62 = vpop.eup %1404 }
 0x6e3   :  { %v751_v63 = vadd.f32 1.0, %v1405_v62 }
 0x6e4   :  { %763 = vrot.lane.b32.xlu0 %v761_v23, %s1471_s29 }
 0x6e5   :  { %1406 = vrcp.f32 %v751_v63 }
 0x6ef   :  { %v1407_v24 = vpop.eup %1406 }
 0x756   :  { %v764_v2 = vpop.permute.xlu0 %763 }
 0x757   :  { %v766_v0 = vadd.f32 %v764_v2, %v760_v60 }
 0x759   :  { %1408 = vtanh.f32 %v766_v0 }
 0x763   :  { %v1409_v3 = vpop.eup %1408 }
 0x764   :  { %v768_v4 = vmul.f32 %v1409_v3, %v1407_v24 }
 0x766   :  { %1192 = vmatmul.mubr.msk.f32.vlgmr.msra.gmra.mrb[8].mxu0 %vm57_vm0, %v768_v4  ;;  %769 = vst.msk [vmem:[#allocation2 + $0x8] sm:$0x3] %vm257_vm1, %v768_v4 }
 0x767   :  { %770 = vst.msk [vmem:[#allocation2 + $0x6] sm:$0x3] %vm260_vm2, %v768_v4  ;;  %1332 = vmatpush1.bf16.msra.mxu0 %v1551_v13  ;;  %1106 = vmatprep.mubr.f32.mxu0 %v1470_v7 }
 0x768   :  { %1334 = vmatprep.subr.bf16.mxu0 %v1573_v22 }
 0x76b   :  { %1336 = vmatpush1.bf16.msra.mxu0 %v1584_v26 }
 0x76c   :  { %1338 = vmatprep.subr.bf16.mxu0 %v1605_v35 }
 0x76f   :  { %1340 = vmatpush1.bf16.msra.mxu0 %v1617_v39  ;;  %v883_v39 = vrot.slane %v766_v0, 6 }
 0x770   :  { %1342 = vmatprep.subr.bf16.mxu0 %v1629_v44 }
 0x773   :  { %1344 = vmatpush1.bf16.msra.mxu0 %v1638_v48 }
 0x839   :  { %v856_v5 = vpop.f32.mrb[8].mxu0 }
 0x83a   :  { %v863_v6 = vrot.slane %v856_v5, 6  ;;  %v858_v8 = vpop.f32.mrb[9].mxu0 }
 0x83b   :  { %v864_v7 = vrot.slane %v858_v8, 6 }
 0x83c   :  { %v867_v10 = vadd.f32 %v863_v6, %v1756_v46 }
 0x83d   :  { %v868_v22 = vadd.f32 %v864_v7, %v1761_v52 }
 0x83e   :  { %v1193_v13 = vmul.f32 -1.442695, %v867_v10 }
 0x83f   :  { %v1194_v48 = vmul.f32 -1.442695, %v868_v22 }
 0x840   :  { %1410 = vpow2.f32 %v1193_v13 }
 0x841   :  { %1412 = vtanh.f32 %v868_v22 }
 0x84a   :  { %v1411_v11 = vpop.eup %1410 }
 0x84b   :  { %v875_v26 = vadd.f32 1.0, %v1411_v11  ;;  %v1413_v35 = vpop.eup %1412 }
 0x84d   :  { %1414 = vrcp.f32 %v875_v26 }
 0x84e   :  { %1416 = vpow2.f32 %v1194_v48 }
 0x857   :  { %v1415_v12 = vpop.eup %1414 }
 0x858   :  { %v886_v44 = vmul.f32 %v1415_v12, %v1413_v35  ;;  %v885_v14 = vmul.f32 %v1415_v12, %v883_v39  ;;  %v1417_v15 = vpop.eup %1416 }
 0x859   :  { %v876_v16 = vadd.f32 1.0, %v1417_v15 }
 0x85a   :  { %888 = vrot.lane.b32.xlu1 %v886_v44, %s1471_s29 }
 0x85b   :  { %1418 = vrcp.f32 %v876_v16 }
 0x865   :  { %v1419_v19 = vpop.eup %1418 }
 0x8cc   :  { %v889_v17 = vpop.permute.xlu1 %888 }
 0x8cd   :  { %v891_v18 = vadd.f32 %v889_v17, %v885_v14 }
 0x8cf   :  { %1420 = vtanh.f32 %v891_v18  ;;  %v1009_v9 = vrot.slane %v891_v18, 6 }
 0x8d9   :  { %v1421_v20 = vpop.eup %1420 }
 0x8da   :  { %v893_v21 = vmul.f32 %v1421_v20, %v1419_v19 }
 0x8dc   :  { %894 = vst.msk [vmem:[#allocation2 + $0x8] sm:$0xc] %vm386_vm3, %v893_v21  ;;  %v913_v25 = vrot.slane %v893_v21, 2 }
 0x8dd   :  { %895 = vst.msk [vmem:[#allocation2 + $0x2] sm:$0xc] %vm389_vm4, %v893_v21 }
 0x8de   :  { %1195 = vmatmul.mubr.msk.f32.vlgmr.msra.gmra.mrb[6].mxu1 %vm57_vm0, %v913_v25 }
 0x9b1   :  { %v982_v27 = vpop.f32.mrb[6].mxu1 }
 0x9b2   :  { %v989_v28 = vrot.slane %v982_v27, 4  ;;  %v984_v29 = vpop.f32.mrb[7].mxu1 }
 0x9b3   :  { %v990_v32 = vrot.slane %v984_v29, 4 }
 0x9b4   :  { %v993_v30 = vadd.f32 %v989_v28, %v1756_v46 }
 0x9b5   :  { %v994_v33 = vadd.f32 %v990_v32, %v1761_v52 }
 0x9b6   :  { %v1196_v31 = vmul.f32 -1.442695, %v993_v30 }
 0x9b7   :  { %v1197_v41 = vmul.f32 -1.442695, %v994_v33 }
 0x9b8   :  { %1422 = vpow2.f32 %v1196_v31 }
 0x9b9   :  { %1424 = vtanh.f32 %v994_v33 }
 0x9c2   :  { %v1423_v34 = vpop.eup %1422 }
 0x9c3   :  { %v1001_v36 = vadd.f32 1.0, %v1423_v34  ;;  %v1425_v37 = vpop.eup %1424 }
 0x9c5   :  { %1426 = vrcp.f32 %v1001_v36 }
 0x9c6   :  { %1428 = vpow2.f32 %v1197_v41 }
 0x9cf   :  { %v1427_v38 = vpop.eup %1426 }
 0x9d0   :  { %v1012_v57 = vmul.f32 %v1427_v38, %v1425_v37  ;;  %v1011_v40 = vmul.f32 %v1427_v38, %v1009_v9  ;;  %v1429_v1 = vpop.eup %1428 }
 0x9d1   :  { %v1002_v42 = vadd.f32 1.0, %v1429_v1 }
 0x9d2   :  { %1014 = vrot.lane.b32.xlu0 %v1012_v57, %s1471_s29 }
 0x9d3   :  { %1430 = vrcp.f32 %v1002_v42 }
 0x9dd   :  { %v1431_v47 = vpop.eup %1430 }
 0xa44   :  { %v1015_v43 = vpop.permute.xlu0 %1014 }
 0xa45   :  { %v1017_v45 = vadd.f32 %v1015_v43, %v1011_v40 }
 0xa47   :  { %1432 = vtanh.f32 %v1017_v45  ;;  %v1135_v63 = vrot.slane %v1017_v45, 6 }
 0xa51   :  { %v1433_v49 = vpop.eup %1432 }
 0xa52   :  { %v1019_v50 = vmul.f32 %v1433_v49, %v1431_v47 }
 0xa54   :  { %1020 = vst.msk [vmem:[#allocation2 + $0x8] sm:$0x30] %vm516_vm5, %v1019_v50  ;;  %v1039_v51 = vrot.slane %v1019_v50, 4 }
 0xa55   :  { %1021 = vst.msk [vmem:[#allocation2 - $0x2] sm:$0x30] %vm519_vm6, %v1019_v50 }
 0xa56   :  { %1198 = vmatmul.mubr.msk.f32.vlgmr.msra.gmra.mrb[10].mxu0 %vm57_vm0, %v1039_v51 }
 0xb29   :  { %v1108_v53 = vpop.f32.mrb[10].mxu0 }
 0xb2a   :  { %v1115_v54 = vrot.slane %v1108_v53, 2  ;;  %v1110_v56 = vpop.f32.mrb[11].mxu0 }
 0xb2b   :  { %v1116_v55 = vrot.slane %v1110_v56, 2 }
 0xb2c   :  { %v1119_v58 = vadd.f32 %v1115_v54, %v1756_v46 }
 0xb2d   :  { %v1120_v23 = vadd.f32 %v1116_v55, %v1761_v52 }
 0xb2e   :  { %v1199_v59 = vmul.f32 -1.442695, %v1119_v58 }
 0xb2f   :  { %v1200_v3 = vmul.f32 -1.442695, %v1120_v23 }
 0xb30   :  { %1434 = vpow2.f32 %v1199_v59 }
 0xb31   :  { %1436 = vtanh.f32 %v1120_v23 }
 0xb3a   :  { %v1435_v60 = vpop.eup %1434 }
 0xb3b   :  { %v1127_v61 = vadd.f32 1.0, %v1435_v60  ;;  %v1437_v62 = vpop.eup %1436 }
 0xb3d   :  { %1438 = vrcp.f32 %v1127_v61 }
 0xb3e   :  { %1440 = vpow2.f32 %v1200_v3 }
 0xb47   :  { %v1439_v2 = vpop.eup %1438 }
 0xb48   :  { %v1138_v0 = vmul.f32 %v1439_v2, %v1437_v62  ;;  %v1137_v24 = vmul.f32 %v1439_v2, %v1135_v63  ;;  %v1441_v4 = vpop.eup %1440 }
 0xb49   :  { %v1128_v46 = vadd.f32 1.0, %v1441_v4 }
 0xb4a   :  { %1140 = vrot.lane.b32.xlu1 %v1138_v0, %s1471_s29 }
 0xb4b   :  { %1442 = vrcp.f32 %v1128_v46 }
 0xb55   :  { %v1443_v52 = vpop.eup %1442 }
 0xbbc   :  { %v1141_v5 = vpop.permute.xlu1 %1140 }
 0xbbd   :  { %v1143_v6 = vadd.f32 %v1141_v5, %v1137_v24 }
 0xbbf   :  { %1444 = vtanh.f32 %v1143_v6  ;;  %1150 = vst.msk [vmem:[%s1819_s8 - $0x6] sm:$0xc0] %vm1148_vm9, %v1143_v6 }
 0xbc9   :  { %v1445_v8 = vpop.eup %1444 }
 0xbca   :  { %v1145_v10 = vmul.f32 %v1445_v8, %v1443_v52 }
 0xbcc   :  { %1146 = vst.msk [vmem:[#allocation2 + $0x8] sm:$0xc0] %vm646_vm7, %v1145_v10 }
 0xbcd   :  { %1147 = vst.msk [vmem:[#allocation2 - $0x6] sm:$0xc0] %vm649_vm8, %v1145_v10 }
 0xbce   :  { %1149 = vst.msk [vmem:[%s1818_s7 - $0x6] sm:$0xc0] %vm1148_vm9, %v1145_v10 }
 0xbcf   :  { %1457 = shalt.err (!%p1454_p4)
}
 0xbd0   :  { %s1458_s16 = scalar_lea.hbm %s1817_s6, 256 }
 0xbd1   :  { %p1459_p5 = scmp.ne.s32.totalorder %s1817_s6, %s1458_s16  ;;  %p1462_p6 = scmp.lt.u32.totalorder %s1458_s16, %s1817_s6 }
 0xbd3   :  { %p1464_p7 = pnand %p1462_p6, %p1459_p5 }
 0xbd5   :  { %1467 = shalt.err (!%p1464_p7)
}
 0xbd6   :  { %s1473_s7 = smov 32   ;;  %s1474_s21 = smov 2  }
 0xbd7   :  { %1162 = dma.vmem_to_hbm [thread:$0]  %s1157_s11, 256, %s1817_s6, [#allocation3], %s1473_s7, %s1473_s7, %s1474_s21  }
 0xbd8   :  { %1468 = dma.done.wait [#allocation3], 256  }
 0xbd9   :  { %1469 = vsyncadd [#allocation3], 4294967040 }
 0xbda   :  { %1174 = vsyncpa [#allocation3], 1 }

</bundles_post_ra>
